<compile_context>
chip_gen: v6e
topology: v6e:2x2x1
jax: 0.10.0
libtpu: 0.0.40
codegen_flags: <defaults>
</compile_context>

<pallas_src>
import jax
import jax.numpy as jnp
from jax.experimental import pallas as pl
from jax.experimental.pallas import tpu as pltpu

_LANE = 128  # TPU vreg lane width


def _linear_kernel(xt_ref, w_ref, b_ref, o_ref):
    # xt_ref: (F, TILE_B) f32  -- batch on lanes, features on sublanes
    # w_ref : (F, 1)      f32  -- lane-broadcast on the VPU
    # b_ref : (1, 1)      f32  -- SMEM scalar
    # o_ref : (1, TILE_B) f32  -- lane-dense output slab
    prod = xt_ref[...] * w_ref[...]               # VPU elementwise (no MXU detour)
    acc = jnp.sum(prod, axis=0, keepdims=True)    # XLU reduce over F (sublane axis)
    o_ref[...] = (acc + b_ref[0, 0]).astype(o_ref.dtype)


def linear_regression_forward(x, weight, bias, *, tile_b=512,
                              vmem_budget_bytes=8 * 1024 * 1024):
    """y = x @ weight.T + bias

    x:      (B, F)  float32
    weight: (1, F)  float32   (same layout as nn.Linear(feature_dim, 1).weight)
    bias:   (1,)    float32
    returns (B, 1)  float32
    """
    B, F = x.shape
    itemsize = jnp.dtype(x.dtype).itemsize

    # --- tile sizing: biggest lane-aligned tile that double-buffers within the
    #     conservative VMEM budget (safe on v5e 16MiB / v6e 32MiB / v7x 32MiB scoped).
    max_tile_b = max(_LANE, (vmem_budget_bytes // (2 * F * itemsize)) // _LANE * _LANE)
    b_pad_min = pl.cdiv(B, _LANE) * _LANE
    tb = min(tile_b, max_tile_b, b_pad_min)
    tb = max(_LANE, (tb // _LANE) * _LANE)
    b_pad = pl.cdiv(B, tb) * tb

    # --- layout plumbing in the wrapper: batch -> lane axis, zero-pad remainder.
    xt = jnp.transpose(x)                                   # (F, B)
    if b_pad != B:
        xt = jnp.pad(xt, ((0, 0), (0, b_pad - B)))          # (F, B_pad)
    w_col = jnp.reshape(weight, (1, F)).T.astype(x.dtype)   # (F, 1)
    b_sc = jnp.reshape(bias, (1, 1)).astype(x.dtype)        # (1, 1) -> SMEM scalar

    grid = (b_pad // tb,)

    out = pl.pallas_call(
        _linear_kernel,
        out_shape=jax.ShapeDtypeStruct((1, b_pad), x.dtype),
        grid_spec=pltpu.PrefetchScalarGridSpec(
            num_scalar_prefetch=0,
            grid=grid,
            in_specs=[
                pl.BlockSpec((F, tb), lambda i: (0, i)),     # x^T tiles over batch
                pl.BlockSpec((F, 1), lambda i: (0, 0)),      # weight column, resident
                pl.BlockSpec(memory_space=pltpu.MemorySpace.SMEM),  # bias scalar
            ],
            out_specs=pl.BlockSpec((1, tb), lambda i: (0, i)),      # lane-dense out
        ),
        compiler_params=pltpu.CompilerParams(
            dimension_semantics=("parallel",),   # megacore sharding on v7x; free on v5e/v6e
        ),
        cost_estimate=pl.CostEstimate(
            flops=2 * b_pad * F,
            transcendentals=0,
            bytes_accessed=itemsize * (b_pad * F + F + b_pad),
        ),
    )(xt, w_col, b_sc)

    return out[0, :B].reshape(B, 1)


if __name__ == "__main__":
    feature_dim = 32
    batch = 8

    key = jax.random.PRNGKey(0)
    kx, kw, kb = jax.random.split(key, 3)

    # Deterministic synthetic inputs / params (shapes match nn.Linear(feature_dim, 1)).
    x = jax.random.normal(kx, (batch, feature_dim), dtype=jnp.float32)
    weight = jax.random.normal(kw, (1, feature_dim), dtype=jnp.float32) * 0.1
    bias = jax.random.normal(kb, (1,), dtype=jnp.float32) * 0.1

    y = linear_regression_forward(x, weight, bias)
    jax.block_until_ready(y)

    # Reference check against plain JAX.
    y_ref = x @ weight.T + bias
    assert y.shape == (batch, 1)
    assert jnp.allclose(y, y_ref, atol=1e-5, rtol=1e-5)

    print("KERNEL_OK")
</pallas_src>

<mosaic_0001>
module attributes {stable_mosaic.version = 11 : i64} {
  func.func @_linear_kernel(%arg0: i32, %arg1: memref<32x128xf32, #tpu.memory_space<vmem>>, %arg2: memref<32x1xf32, #tpu.memory_space<vmem>>, %arg3: memref<1x1xf32, #tpu.memory_space<smem>>, %arg4: memref<1x128xf32, #tpu.memory_space<vmem>>) attributes {dimension_semantics = [#tpu.dimension_semantics<parallel>], iteration_bounds = array<i64: 1>, scalar_prefetch = 0 : i64, scratch_operands = 0 : i64, tpu.core_type = #tpu.core_type<tc>, window_params = [{transform_indices = @transform_0, window_bounds = array<i64: 32, 128>}, {pipeline_mode = #tpu.pipeline_mode<synchronous>, transform_indices = @transform_1, window_bounds = array<i64: 32, 1>}, {transform_indices = @transform_2, window_bounds = array<i64: 1, 1>}, {transform_indices = @transform_3, window_bounds = array<i64: 1, 128>}]} {
    %c0 = arith.constant 0 : index
    %c0_0 = arith.constant 0 : index
    %0 = vector.load %arg1[%c0, %c0_0] : memref<32x128xf32, #tpu.memory_space<vmem>>, vector<32x128xf32>
    %c0_1 = arith.constant 0 : index
    %c0_2 = arith.constant 0 : index
    %1 = vector.load %arg2[%c0_1, %c0_2] : memref<32x1xf32, #tpu.memory_space<vmem>>, vector<32x1xf32>
    %2 = vector.broadcast %1 : vector<32x1xf32> to vector<32x128xf32>
    %3 = arith.mulf %0, %2 : vector<32x128xf32>
    %cst = arith.constant dense<0.000000e+00> : vector<128xf32>
    %4 = vector.multi_reduction <add>, %3, %cst [0] : vector<32x128xf32> to vector<128xf32>
    %5 = vector.shape_cast %4 : vector<128xf32> to vector<1x128xf32>
    %c0_3 = arith.constant 0 : index
    %c0_4 = arith.constant 0 : index
    %6 = memref.load %arg3[%c0_3, %c0_4] : memref<1x1xf32, #tpu.memory_space<smem>>
    %7 = vector.broadcast %6 : f32 to vector<1x128xf32>
    %8 = arith.addf %5, %7 : vector<1x128xf32>
    %c0_5 = arith.constant 0 : index
    %c0_6 = arith.constant 0 : index
    %9 = vector.load %arg4[%c0_5, %c0_6] : memref<1x128xf32, #tpu.memory_space<vmem>>, vector<1x128xf32>
    tpu.vector_store %arg4[%c0_5, %c0_6], %8 {strides = array<i32>} : memref<1x128xf32, #tpu.memory_space<vmem>>, vector<1x128xf32>,
    return
  }
  func.func @transform_0(%arg0: i32) -> (i32, i32) {
    %c0_i32 = arith.constant 0 : i32
    %c0_i32_0 = arith.constant 0 : i32
    return %c0_i32, %arg0 : i32, i32
  }
  func.func @transform_1(%arg0: i32) -> (i32, i32) {
    %c0_i32 = arith.constant 0 : i32
    %c0_i32_0 = arith.constant 0 : i32
    %c0_i32_1 = arith.constant 0 : i32
    return %c0_i32, %c0_i32_0 : i32, i32
  }
  func.func @transform_2(%arg0: i32) -> (i32, i32) {
    %c0_i32 = arith.constant 0 : i32
    %c0_i32_0 = arith.constant 0 : i32
    %c0_i32_1 = arith.constant 0 : i32
    return %c0_i32, %c0_i32_0 : i32, i32
  }
  func.func @transform_3(%arg0: i32) -> (i32, i32) {
    %c0_i32 = arith.constant 0 : i32
    %c0_i32_0 = arith.constant 0 : i32
    return %c0_i32, %arg0 : i32, i32
  }
}

</mosaic_0001>

<bundles_post_ra>
// kernel: tpu_custom_call.1
= control target key start
LH: loop header
LB: loop body
LE: loop exit
PB: predicated region body
PF: predicated region fallthrough
CT: control target
= control target key end

     0   :  { %v101_v2 = vmov 0   ;;  %s153_s0 = inlined_call_operand.vmem [shape: f32[32,128], index: 0, kind: input, shape index: {}]   ;;  %s154_s1 = inlined_call_operand.vmem [shape: f32[32,1], index: 1, kind: input, shape index: {}]   ;;  %s155_s2 = inlined_call_operand.<no memory space> [shape: f32[1,1], index: 2, kind: input, shape index: {}]   ;;  %s156_s3 = inlined_call_operand.hbm [shape: f32[1,128], index: 3, kind: output, shape index: {}]  }
   0x1   :  { %v22_v0 = vld [vmem:[%s154_s1 + $0x10] sm:$0xff]  ;;  %v20_v1 = vld [vmem:[%s154_s1] sm:$0xff]  ;;  %78 = vset.pattern.permute.xlu1 %v101_v2  ;;  %77 = vset.pattern.permute.xlu0 %v101_v2 }
   0x2   :  { %36 = vperm.xlu1 %78, %v22_v0   ;;  %26 = vperm.xlu0 %77, %v20_v1  }
   0x3   :  { %9 = vsyncpa [#allocation4], 0  ;;  %v23_v3 = vld [vmem:[%s154_s1 + $0x18] sm:$0xff]  ;;  %v21_v4 = vld [vmem:[%s154_s1 + $0x8] sm:$0xff]  ;;  %v58_v25 = vstv %s155_s2  ;;  %s102_s29 = smov [#allocation3]  }
   0x4   :  { %v16_v7 = vld [vmem:[%s153_s0] sm:$0xff]  ;;  %v17_v8 = vld [vmem:[%s153_s0 + $0x8] sm:$0xff]  ;;  %v18_v9 = vld [vmem:[%s153_s0 + $0x10] sm:$0xff]  ;;  %s67_s30 = sshll.u32 %s102_s29, 4  ;;  %s68_s30 = int_to_ptr.vmem [resolvable:$true] %s67_s30 }
   0x5   :  { %v19_v14 = vld [vmem:[%s153_s0 + $0x18] sm:$0xff]  ;;  %s79_s0 = scalar_lea.vmem %s68_s30, 16  ;;  %s83_s4 = scalar_lea.vmem %s68_s30, 32 }
   0x6   :  { %41 = vperm.xlu1 %78, %v23_v3   ;;  %31 = vperm.xlu0 %77, %v21_v4   ;;  %p80_p0 = scmp.ne.s32.totalorder %s68_s30, %s79_s0  ;;  %p84_p1 = scmp.lt.s32.totalorder %s68_s30, %s68_s30 }
   0x7   :  { %p85_p2 = scmp.lt.s32.totalorder %s83_s4, %s79_s0 }
   0x9   :  { %p86_p3 = por %p85_p2, %p84_p1 }
   0xb   :  { %p87_p4 = pnand %p86_p3, %p80_p0 }
  0x7d   :  { %v37_v5 = vpop.permute.xlu1 %36  ;;  %v27_v6 = vpop.permute.xlu0 %26 }
  0x7e   :  { %v44_v11 = vmul.f32 %v27_v6, %v16_v7  ;;  %v46_v15 = vmul.f32 %v37_v5, %v18_v9 }
  0x81   :  { %v32_v10 = vpop.permute.xlu0 %31  ;;  %v42_v13 = vpop.permute.xlu1 %41 }
  0x82   :  { %v45_v12 = vmul.f32 %v32_v10, %v17_v8  ;;  %v47_v17 = vmul.f32 %v42_v13, %v19_v14 }
  0x84   :  { %v48_v16 = vadd.f32 %v45_v12, %v44_v11 }
  0x86   :  { %v49_v18 = vadd.f32 %v48_v16, %v46_v15 }
  0x88   :  { %v50_v19 = vadd.f32 %v49_v18, %v47_v17 }
  0x8a   :  { %v51_v20 = vrot.slane %v50_v19, 4 }
  0x8c   :  { %v52_v21 = vadd.f32 %v51_v20, %v50_v19 }
  0x8e   :  { %v53_v22 = vrot.slane %v52_v21, 2 }
  0x90   :  { %v54_v23 = vadd.f32 %v53_v22, %v52_v21 }
  0x92   :  { %v55_v24 = vrot.slane %v54_v23, 1 }
  0x94   :  { %v56_v26 = vadd.f32 %v55_v24, %v54_v23 }
  0x96   :  { %v59_v27 = vadd.f32 %v58_v25, %v56_v26 }
  0x98   :  { %60 = vst [vmem:[#allocation3] sm:$0x1] %v59_v27 }
  0x99   :  { %90 = shalt.err (!%p87_p4)
}
  0x9a   :  { %70 = dma.vmem_to_hbm [thread:$0]  %s68_s30, 16, %s156_s3, [#allocation4]  }
  0x9b   :  { %99 = dma.done.wait [#allocation4], 16  }
  0x9c   :  { %100 = vsyncadd [#allocation4], 4294967280 }
  0x9d   :  { %74 = vsyncpa [#allocation4], 1 }

</bundles_post_ra>
